<compile_context>
chip_gen: v5e
topology: v5e:2x2
jax: 0.10.0
libtpu: 0.0.40
codegen_flags: <defaults>
</compile_context>

<pallas_src>
import functools

import jax
import jax.numpy as jnp
from jax.experimental import pallas as pl
from jax.experimental.pallas import tpu as pltpu


def _dsc_kernel(x_ref, dww_ref, pwb_ref, bias_ref, o_ref, *, width, hw_pad, hwp):
    # x_ref:    (N*Cin, HWP)      batch folded into sublanes, spatial on lanes (padded)
    # dww_ref:  (N*Cin, 9)        depthwise taps (tiled over batch), t = ky*3 + kx
    # pwb_ref:  (N*Cout, N*Cin)   block-diagonal pointwise weights (one block / batch)
    # bias_ref: (N*Cout, 1)       folded bias = pw @ dw_b + pw_b, tiled over batch (f32)
    # o_ref:    (N*Cout, HW_pad)  flattened output; wrapper keeps the valid (Ho, Wo) part
    rows = x_ref.shape[0]

    x = x_ref[...]            # loaded once; the 9 taps are rotations of this slab
    dww = dww_ref[...]

    # Depthwise 3x3 (valid): tap[p] = x[p + off] with off = ky*W + kx.  Each tap is a
    # static lane rotation (XLU) + aligned slice; the padded slab guarantees
    # p + off < HWP for every kept position, so the wraparound lanes are never read.
    acc = jnp.zeros((rows, hw_pad), jnp.float32)
    for ky in range(3):
        for kx in range(3):
            off = ky * width + kx
            t = ky * 3 + kx
            if off == 0:
                tap = x[:, :hw_pad]
            else:
                tap = pltpu.roll(x, hwp - off, axis=1)[:, :hw_pad]
            acc = acc + tap * dww[:, t:t + 1]        # per-sublane (channel) scale, f32 acc

    # Pointwise 1x1 for all batches in one MXU pass (block-diagonal weights);
    # the MXU is otherwise idle, so its padding waste is free and this removes
    # the rank-1 VPU/XLU broadcast chain from the binding vector slots.
    out = jnp.dot(pwb_ref[...], acc, preferred_element_type=jnp.float32)
    o_ref[...] = (out + bias_ref[...]).astype(o_ref.dtype)


def depthwise_separable_conv(x_nchw, dw_w, dw_b, pw_w, pw_b):
    """x_nchw: (N, Cin, H, W). dw_w: (Cin,1,3,3). dw_b: (Cin,).
    pw_w: (Cout, Cin, 1, 1). pw_b: (Cout,). Returns (N, Cout, H-2, W-2)."""
    N, Cin, H, W = x_nchw.shape
    Cout = pw_w.shape[0]
    Ho, Wo = H - 2, W - 2
    HW = H * W

    # Lane-dense output: pad flattened spatial to a multiple of 128 (unmasked vst
    # even when HW % 128 != 0).
    HW_pad = ((HW + 127) // 128) * 128
    # Input slab: every tap shift (max offset 2*W + 2) of length HW_pad must stay
    # in bounds, and the lane axis must be 128-aligned.
    HWP = ((HW_pad + 2 * W + 2 + 127) // 128) * 128

    f32 = jnp.float32
    x_flat = jnp.pad(x_nchw.reshape(N * Cin, HW).astype(f32),
                     ((0, 0), (0, HWP - HW)))
    # Depthwise taps tiled across batch so they line up with the N*Cin sublanes.
    dww = jnp.tile(dw_w.reshape(Cin, 9).astype(f32), (N, 1))
    # Block-diagonal pointwise weights: one (Cout, Cin) block per batch element,
    # so the whole pointwise stage is a single matmul over the packed slab.
    pww = pw_w.reshape(Cout, Cin).astype(f32)
    pw_block = jnp.kron(jnp.eye(N, dtype=f32), pww)                 # (N*Cout, N*Cin)
    # Fold the depthwise bias through the pointwise conv (exact):
    #   pw @ (dw(x) + dw_b) + pw_b == pw @ dw(x) + (pw @ dw_b + pw_b)
    bias = pww @ dw_b.astype(f32).reshape(Cin, 1) + pw_b.astype(f32).reshape(Cout, 1)
    bias = jnp.tile(bias, (N, 1))                                   # (N*Cout, 1)

    kernel = functools.partial(_dsc_kernel, width=W, hw_pad=HW_pad, hwp=HWP)
    # TODO(synk): for large H*W, add a second 'parallel' grid axis tiling the
    # flattened spatial dim with a 2*W+2 halo per tile (re-derive tile size vs.
    # v7x's 64 MiB VMEM) so both v7x TensorCores stay busy and DMA pipelines.
    out_flat = pl.pallas_call(
        kernel,
        out_shape=jax.ShapeDtypeStruct((N * Cout, HW_pad), f32),
        grid_spec=pltpu.PrefetchScalarGridSpec(
            num_scalar_prefetch=0,
            grid=(1,),
            in_specs=[
                pl.BlockSpec((N * Cin, HWP), lambda i: (0, 0)),
                pl.BlockSpec((N * Cin, 9), lambda i: (0, 0)),
                pl.BlockSpec((N * Cout, N * Cin), lambda i: (0, 0)),
                pl.BlockSpec((N * Cout, 1), lambda i: (0, 0)),
            ],
            out_specs=pl.BlockSpec((N * Cout, HW_pad), lambda i: (0, 0)),
        ),
        compiler_params=pltpu.CompilerParams(
            dimension_semantics=("arbitrary",),
            vmem_limit_bytes=4 * 1024 * 1024),
    )(x_flat, dww, pw_block, bias)

    # Valid output region: first HW lanes -> (H, W) grid -> rows [0,Ho), cols [0,Wo).
    out = out_flat[:, :HW].reshape(N, Cout, H, W)
    return out[:, :, :Ho, :Wo].astype(x_nchw.dtype)


def _reference(x, dw_w, dw_b, pw_w, pw_b):
    """Pure-JAX NCHW reference mirroring the PyTorch module."""
    in_ch = x.shape[1]
    y = jax.lax.conv_general_dilated(
        x, dw_w, (1, 1), 'VALID', feature_group_count=in_ch,
        dimension_numbers=('NCHW', 'OIHW', 'NCHW'))
    y = y + dw_b.reshape(1, -1, 1, 1)
    z = jax.lax.conv_general_dilated(
        y, pw_w, (1, 1), 'VALID',
        dimension_numbers=('NCHW', 'OIHW', 'NCHW'))
    return z + pw_b.reshape(1, -1, 1, 1)


if __name__ == "__main__":
    key = jax.random.PRNGKey(0)
    N, in_ch, out_ch, H, W = 2, 4, 8, 16, 16

    k_x, k_dw, k_dwb, k_pw, k_pwb = jax.random.split(key, 5)
    x = jax.random.normal(k_x, (N, in_ch, H, W), dtype=jnp.float32)
    # Deterministic synthetic parameters (shapes match nn.Conv2d init).
    dw_w = 0.2 * jax.random.normal(k_dw, (in_ch, 1, 3, 3), dtype=jnp.float32)
    dw_b = 0.1 * jax.random.normal(k_dwb, (in_ch,), dtype=jnp.float32)
    pw_w = 0.2 * jax.random.normal(k_pw, (out_ch, in_ch, 1, 1), dtype=jnp.float32)
    pw_b = 0.1 * jax.random.normal(k_pwb, (out_ch,), dtype=jnp.float32)

    out = depthwise_separable_conv(x, dw_w, dw_b, pw_w, pw_b)
    out = jax.block_until_ready(out)

    ref = jax.block_until_ready(_reference(x, dw_w, dw_b, pw_w, pw_b))
    assert out.shape == (N, out_ch, H - 2, W - 2), out.shape
    assert jnp.allclose(out, ref, atol=1e-4, rtol=1e-4), float(jnp.max(jnp.abs(out - ref)))

    print("KERNEL_OK")
</pallas_src>

<mosaic_0001>
module attributes {stable_mosaic.version = 11 : i64} {
  func.func @_dsc_kernel(%arg0: i32, %arg1: memref<8x384xf32, #tpu.memory_space<vmem>>, %arg2: memref<8x9xf32, #tpu.memory_space<vmem>>, %arg3: memref<16x8xf32, #tpu.memory_space<vmem>>, %arg4: memref<16x1xf32, #tpu.memory_space<vmem>>, %arg5: memref<16x256xf32, #tpu.memory_space<vmem>>) attributes {dimension_semantics = [#tpu.dimension_semantics<arbitrary>], iteration_bounds = array<i64: 1>, scalar_prefetch = 0 : i64, scratch_operands = 0 : i64, tpu.core_type = #tpu.core_type<tc>, window_params = [{pipeline_mode = #tpu.pipeline_mode<synchronous>, transform_indices = @transform_0, window_bounds = array<i64: 8, 384>}, {pipeline_mode = #tpu.pipeline_mode<synchronous>, transform_indices = @transform_1, window_bounds = array<i64: 8, 9>}, {pipeline_mode = #tpu.pipeline_mode<synchronous>, transform_indices = @transform_2, window_bounds = array<i64: 16, 8>}, {pipeline_mode = #tpu.pipeline_mode<synchronous>, transform_indices = @transform_3, window_bounds = array<i64: 16, 1>}, {pipeline_mode = #tpu.pipeline_mode<synchronous>, transform_indices = @transform_4, window_bounds = array<i64: 16, 256>}]} {
    %c0 = arith.constant 0 : index
    %c0_0 = arith.constant 0 : index
    %0 = vector.load %arg1[%c0, %c0_0] : memref<8x384xf32, #tpu.memory_space<vmem>>, vector<8x384xf32>
    %c0_1 = arith.constant 0 : index
    %c0_2 = arith.constant 0 : index
    %1 = vector.load %arg2[%c0_1, %c0_2] : memref<8x9xf32, #tpu.memory_space<vmem>>, vector<8x9xf32>
    %cst = arith.constant 0.000000e+00 : f32
    %2 = vector.broadcast %cst : f32 to vector<8x256xf32>
    %3 = vector.extract_strided_slice %0 {offsets = [0, 0], sizes = [8, 256], strides = [1, 1]} : vector<8x384xf32> to vector<8x256xf32>
    %4 = vector.extract_strided_slice %1 {offsets = [0, 0], sizes = [8, 1], strides = [1, 1]} : vector<8x9xf32> to vector<8x1xf32>
    %5 = vector.broadcast %4 : vector<8x1xf32> to vector<8x256xf32>
    %6 = arith.mulf %3, %5 : vector<8x256xf32>
    %7 = arith.addf %2, %6 : vector<8x256xf32>
    %c383_i32 = arith.constant 383 : i32
    %8 = tpu.dynamic_rotate %0 by %c383_i32 dim 1 : vector<8x384xf32>, i32 -> vector<8x384xf32>
    %9 = vector.extract_strided_slice %8 {offsets = [0, 0], sizes = [8, 256], strides = [1, 1]} : vector<8x384xf32> to vector<8x256xf32>
    %10 = vector.extract_strided_slice %1 {offsets = [0, 1], sizes = [8, 1], strides = [1, 1]} : vector<8x9xf32> to vector<8x1xf32>
    %11 = vector.broadcast %10 : vector<8x1xf32> to vector<8x256xf32>
    %12 = arith.mulf %9, %11 : vector<8x256xf32>
    %13 = arith.addf %7, %12 : vector<8x256xf32>
    %c382_i32 = arith.constant 382 : i32
    %14 = tpu.dynamic_rotate %0 by %c382_i32 dim 1 : vector<8x384xf32>, i32 -> vector<8x384xf32>
    %15 = vector.extract_strided_slice %14 {offsets = [0, 0], sizes = [8, 256], strides = [1, 1]} : vector<8x384xf32> to vector<8x256xf32>
    %16 = vector.extract_strided_slice %1 {offsets = [0, 2], sizes = [8, 1], strides = [1, 1]} : vector<8x9xf32> to vector<8x1xf32>
    %17 = vector.broadcast %16 : vector<8x1xf32> to vector<8x256xf32>
    %18 = arith.mulf %15, %17 : vector<8x256xf32>
    %19 = arith.addf %13, %18 : vector<8x256xf32>
    %c368_i32 = arith.constant 368 : i32
    %20 = tpu.dynamic_rotate %0 by %c368_i32 dim 1 : vector<8x384xf32>, i32 -> vector<8x384xf32>
    %21 = vector.extract_strided_slice %20 {offsets = [0, 0], sizes = [8, 256], strides = [1, 1]} : vector<8x384xf32> to vector<8x256xf32>
    %22 = vector.extract_strided_slice %1 {offsets = [0, 3], sizes = [8, 1], strides = [1, 1]} : vector<8x9xf32> to vector<8x1xf32>
    %23 = vector.broadcast %22 : vector<8x1xf32> to vector<8x256xf32>
    %24 = arith.mulf %21, %23 : vector<8x256xf32>
    %25 = arith.addf %19, %24 : vector<8x256xf32>
    %c367_i32 = arith.constant 367 : i32
    %26 = tpu.dynamic_rotate %0 by %c367_i32 dim 1 : vector<8x384xf32>, i32 -> vector<8x384xf32>
    %27 = vector.extract_strided_slice %26 {offsets = [0, 0], sizes = [8, 256], strides = [1, 1]} : vector<8x384xf32> to vector<8x256xf32>
    %28 = vector.extract_strided_slice %1 {offsets = [0, 4], sizes = [8, 1], strides = [1, 1]} : vector<8x9xf32> to vector<8x1xf32>
    %29 = vector.broadcast %28 : vector<8x1xf32> to vector<8x256xf32>
    %30 = arith.mulf %27, %29 : vector<8x256xf32>
    %31 = arith.addf %25, %30 : vector<8x256xf32>
    %c366_i32 = arith.constant 366 : i32
    %32 = tpu.dynamic_rotate %0 by %c366_i32 dim 1 : vector<8x384xf32>, i32 -> vector<8x384xf32>
    %33 = vector.extract_strided_slice %32 {offsets = [0, 0], sizes = [8, 256], strides = [1, 1]} : vector<8x384xf32> to vector<8x256xf32>
    %34 = vector.extract_strided_slice %1 {offsets = [0, 5], sizes = [8, 1], strides = [1, 1]} : vector<8x9xf32> to vector<8x1xf32>
    %35 = vector.broadcast %34 : vector<8x1xf32> to vector<8x256xf32>
    %36 = arith.mulf %33, %35 : vector<8x256xf32>
    %37 = arith.addf %31, %36 : vector<8x256xf32>
    %c352_i32 = arith.constant 352 : i32
    %38 = tpu.dynamic_rotate %0 by %c352_i32 dim 1 : vector<8x384xf32>, i32 -> vector<8x384xf32>
    %39 = vector.extract_strided_slice %38 {offsets = [0, 0], sizes = [8, 256], strides = [1, 1]} : vector<8x384xf32> to vector<8x256xf32>
    %40 = vector.extract_strided_slice %1 {offsets = [0, 6], sizes = [8, 1], strides = [1, 1]} : vector<8x9xf32> to vector<8x1xf32>
    %41 = vector.broadcast %40 : vector<8x1xf32> to vector<8x256xf32>
    %42 = arith.mulf %39, %41 : vector<8x256xf32>
    %43 = arith.addf %37, %42 : vector<8x256xf32>
    %c351_i32 = arith.constant 351 : i32
    %44 = tpu.dynamic_rotate %0 by %c351_i32 dim 1 : vector<8x384xf32>, i32 -> vector<8x384xf32>
    %45 = vector.extract_strided_slice %44 {offsets = [0, 0], sizes = [8, 256], strides = [1, 1]} : vector<8x384xf32> to vector<8x256xf32>
    %46 = vector.extract_strided_slice %1 {offsets = [0, 7], sizes = [8, 1], strides = [1, 1]} : vector<8x9xf32> to vector<8x1xf32>
    %47 = vector.broadcast %46 : vector<8x1xf32> to vector<8x256xf32>
    %48 = arith.mulf %45, %47 : vector<8x256xf32>
    %49 = arith.addf %43, %48 : vector<8x256xf32>
    %c350_i32 = arith.constant 350 : i32
    %50 = tpu.dynamic_rotate %0 by %c350_i32 dim 1 : vector<8x384xf32>, i32 -> vector<8x384xf32>
    %51 = vector.extract_strided_slice %50 {offsets = [0, 0], sizes = [8, 256], strides = [1, 1]} : vector<8x384xf32> to vector<8x256xf32>
    %52 = vector.extract_strided_slice %1 {offsets = [0, 8], sizes = [8, 1], strides = [1, 1]} : vector<8x9xf32> to vector<8x1xf32>
    %53 = vector.broadcast %52 : vector<8x1xf32> to vector<8x256xf32>
    %54 = arith.mulf %51, %53 : vector<8x256xf32>
    %55 = arith.addf %49, %54 : vector<8x256xf32>
    %c0_3 = arith.constant 0 : index
    %c0_4 = arith.constant 0 : index
    %56 = vector.load %arg3[%c0_3, %c0_4] : memref<16x8xf32, #tpu.memory_space<vmem>>, vector<16x8xf32>
    %cst_5 = arith.constant dense<0.000000e+00> : vector<16x256xf32>
    %57 = tpu.matmul %56, %55, %cst_5 {dimension_numbers = #tpu.dot_dimension_numbers<[1], [0], [0], [1], [0, 0, 1, 1], [], []>} : vector<16x8xf32>, vector<8x256xf32>, vector<16x256xf32> -> vector<16x256xf32>
    %c0_6 = arith.constant 0 : index
    %c0_7 = arith.constant 0 : index
    %58 = vector.load %arg4[%c0_6, %c0_7] : memref<16x1xf32, #tpu.memory_space<vmem>>, vector<16x1xf32>
    %59 = vector.broadcast %58 : vector<16x1xf32> to vector<16x256xf32>
    %60 = arith.addf %57, %59 : vector<16x256xf32>
    %c0_8 = arith.constant 0 : index
    %c0_9 = arith.constant 0 : index
    %61 = vector.load %arg5[%c0_8, %c0_9] : memref<16x256xf32, #tpu.memory_space<vmem>>, vector<16x256xf32>
    tpu.vector_store %arg5[%c0_8, %c0_9], %60 {strides = array<i32>} : memref<16x256xf32, #tpu.memory_space<vmem>>, vector<16x256xf32>,
    return
  }
  func.func @transform_0(%arg0: i32) -> (i32, i32) {
    %c0_i32 = arith.constant 0 : i32
    %c0_i32_0 = arith.constant 0 : i32
    %c0_i32_1 = arith.constant 0 : i32
    return %c0_i32, %c0_i32_0 : i32, i32
  }
  func.func @transform_1(%arg0: i32) -> (i32, i32) {
    %c0_i32 = arith.constant 0 : i32
    %c0_i32_0 = arith.constant 0 : i32
    %c0_i32_1 = arith.constant 0 : i32
    return %c0_i32, %c0_i32_0 : i32, i32
  }
  func.func @transform_2(%arg0: i32) -> (i32, i32) {
    %c0_i32 = arith.constant 0 : i32
    %c0_i32_0 = arith.constant 0 : i32
    %c0_i32_1 = arith.constant 0 : i32
    return %c0_i32, %c0_i32_0 : i32, i32
  }
  func.func @transform_3(%arg0: i32) -> (i32, i32) {
    %c0_i32 = arith.constant 0 : i32
    %c0_i32_0 = arith.constant 0 : i32
    %c0_i32_1 = arith.constant 0 : i32
    return %c0_i32, %c0_i32_0 : i32, i32
  }
  func.func @transform_4(%arg0: i32) -> (i32, i32) {
    %c0_i32 = arith.constant 0 : i32
    %c0_i32_0 = arith.constant 0 : i32
    %c0_i32_1 = arith.constant 0 : i32
    return %c0_i32, %c0_i32_0 : i32, i32
  }
}

</mosaic_0001>

<bundles_post_ra>
// kernel: tpu_custom_call.1
= control target key start
LH: loop header
LB: loop body
LE: loop exit
PB: predicated region body
PF: predicated region fallthrough
CT: control target
= control target key end

     0   :  { %s320_s19 = smov 127   ;;  %v321_v2 = vmov 0   ;;  %v322_v4 = vmov 1   ;;  %s452_s0 = inlined_call_operand.vmem [shape: f32[8,384], index: 0, kind: input, shape index: {}]   ;;  %s453_s1 = inlined_call_operand.vmem [shape: f32[8,9], index: 1, kind: input, shape index: {}]   ;;  %s454_s2 = inlined_call_operand.vmem [shape: f32[16,8], index: 2, kind: input, shape index: {}]   ;;  %s455_s3 = inlined_call_operand.vmem [shape: f32[16,1], index: 3, kind: input, shape index: {}]   ;;  %s456_s4 = inlined_call_operand.hbm [shape: f32[16,256], index: 4, kind: output, shape index: {}]  }
   0x1   :  { %v20_v0 = vld [vmem:[%s452_s0 + $0x10] sm:$0xff]  ;;  %v371_v1 = vld [vmem:[%s452_s0] sm:$0xff]  ;;  %284 = vset.pattern.permute.xlu1 %v321_v2  ;;  %285 = vset.pattern.permute.xlu2 %v322_v4 }
   0x2   :  { %35 = vrot.lane.b32.xlu1 %v20_v0, %s320_s19  ;;  %31 = vrot.lane.b32.xlu0 %v371_v1, %s320_s19  ;;  %v21_v3 = vld [vmem:[%s453_s1] sm:$0xff] }
   0x3   :  { %9 = vsyncpa [#allocation3], 0  ;;  %43 = vperm.xlu2 %285, %v21_v3   ;;  %v323_v5 = vmov 3   ;;  %v380_v6 = vld [vmem:[%s452_s0 + $0x8] sm:$0xff]  ;;  %s324_s24 = smov 126   ;;  %v325_v7 = vmov 2   ;;  %v37_v17 = vlaneseq }
   0x4   :  { %287 = vset.pattern.permute.xlu0 %v323_v5  ;;  %s326_s1 = smov 112   ;;  %v327_v8 = vmov 4   ;;  %s328_s0 = smov 111   ;;  %v330_v9 = vmov 5   ;;  %v331_v10 = vmov 6   ;;  %v334_v11 = vmov 7  }
   0x5   :  { %s329_s25 = smov 110   ;;  %s332_s26 = smov 96   ;;  %v335_v12 = vmov 8   ;;  %v172_v14 = vld [vmem:[%s455_s3 + $0x8] sm:$0xff]  ;;  %v400_v20 = vand.u32 127, %v37_v17  ;;  %v171_v56 = vld [vmem:[%s455_s3] sm:$0xff] }
   0x6   :  { %s333_s27 = smov 95   ;;  %s336_s28 = smov 94   ;;  %vm183_vm8 = vcmask 64512  }
   0x7   :  { %vm39_vm0 = vcmp.lt.s32.totalorder %v400_v20, 127  ;;  %vm56_vm1 = vcmp.lt.s32.totalorder %v400_v20, 126  ;;  %vm73_vm2 = vcmp.lt.s32.totalorder %v400_v20, 112  ;;  %vm90_vm3 = vcmp.lt.s32.totalorder %v400_v20, 111  ;;  %s246_s13 = sshll.u32 %s456_s4, 4  ;;  %s338_s14 = smov 256   ;;  %s247_s13 = int_to_ptr.hbm [resolvable:$true] %s246_s13 }
   0x8   :  { %vm107_vm4 = vcmp.lt.s32.totalorder %v400_v20, 110  ;;  %vm124_vm5 = vcmp.lt.s32.totalorder %v400_v20, 96  ;;  %vm141_vm6 = vcmp.lt.s32.totalorder %v400_v20, 95  ;;  %vm158_vm7 = vcmp.lt.s32.totalorder %v400_v20, 94  ;;  %s339_s15 = smov 16  }
   0xa   :  { %24 = vperm.xlu1 %284, %v21_v3   ;;  %33 = vrot.lane.b32.xlu0 %v380_v6, %s320_s19 }
   0xb   :  { %50 = vrot.lane.b32.xlu2 %v371_v1, %s324_s24 }
   0xc   :  { %286 = vset.pattern.permute.xlu2 %v325_v7 }
  0x12   :  { %54 = vrot.lane.b32.xlu1 %v20_v0, %s324_s24  ;;  %52 = vrot.lane.b32.xlu0 %v380_v6, %s324_s24 }
  0x13   :  { %60 = vperm.xlu2 %286, %v21_v3  }
  0x1a   :  { %69 = vrot.lane.b32.xlu1 %v380_v6, %s326_s1  ;;  %67 = vrot.lane.b32.xlu0 %v371_v1, %s326_s1 }
  0x1b   :  { %71 = vrot.lane.b32.xlu2 %v20_v0, %s326_s1 }
  0x1c   :  { %288 = vset.pattern.permute.xlu2 %v327_v8 }
  0x22   :  { %84 = vrot.lane.b32.xlu1 %v371_v1, %s328_s0  ;;  %77 = vperm.xlu0 %287, %v21_v3  }
  0x23   :  { %86 = vrot.lane.b32.xlu2 %v380_v6, %s328_s0 }
  0x2a   :  { %88 = vrot.lane.b32.xlu1 %v20_v0, %s328_s0  ;;  %101 = vrot.lane.b32.xlu0 %v371_v1, %s329_s25 }
  0x2b   :  { %289 = vset.pattern.permute.xlu0 %v330_v9  ;;  %94 = vperm.xlu2 %288, %v21_v3  }
  0x32   :  { %103 = vrot.lane.b32.xlu1 %v380_v6, %s329_s25  ;;  %111 = vperm.xlu0 %289, %v21_v3  }
  0x33   :  { %105 = vrot.lane.b32.xlu2 %v20_v0, %s329_s25 }
  0x34   :  { %290 = vset.pattern.permute.xlu2 %v331_v10 }
  0x3a   :  { %118 = vrot.lane.b32.xlu1 %v371_v1, %s332_s26  ;;  %135 = vrot.lane.b32.xlu0 %v371_v1, %s333_s27 }
  0x3b   :  { %291 = vset.pattern.permute.xlu0 %v334_v11  ;;  %120 = vrot.lane.b32.xlu2 %v380_v6, %s332_s26 }
  0x42   :  { %122 = vrot.lane.b32.xlu1 %v20_v0, %s332_s26  ;;  %145 = vperm.xlu0 %291, %v21_v3  }
  0x43   :  { %128 = vperm.xlu2 %290, %v21_v3  }
  0x4a   :  { %137 = vrot.lane.b32.xlu1 %v380_v6, %s333_s27  ;;  %293 = vset.pattern.permute.xlu0 %v321_v2 }
  0x4b   :  { %139 = vrot.lane.b32.xlu2 %v20_v0, %s333_s27  ;;  %175 = vperm.xlu0 %293, %v171_v56  }
  0x4c   :  { %292 = vset.pattern.permute.xlu2 %v335_v12 }
  0x52   :  { %152 = vrot.lane.b32.xlu1 %v371_v1, %s336_s28 }
  0x53   :  { %154 = vrot.lane.b32.xlu2 %v380_v6, %s336_s28 }
  0x5a   :  { %156 = vrot.lane.b32.xlu1 %v20_v0, %s336_s28 }
  0x5b   :  { %162 = vperm.xlu2 %292, %v21_v3  }
  0x5d   :  { %v44_v13 = vpop.permute.xlu2 %43 }
  0x62   :  { %180 = vperm.xlu1 %284, %v172_v14  }
  0x65   :  { %v51_v15 = vpop.permute.xlu2 %50 }
  0x6d   :  { %v61_v16 = vpop.permute.xlu2 %60 }
  0x74   :  { %v36_v18 = vpop.permute.xlu1 %35  ;;  %v32_v19 = vpop.permute.xlu0 %31 }
  0x75   :  { %v72_v21 = vpop.permute.xlu2 %71 }
  0x7c   :  { %v25_v22 = vpop.permute.xlu1 %24  ;;  %v34_v23 = vpop.permute.xlu0 %33 }
  0x7d   :  { %v28_v24 = vmul.f32 %v25_v22, %v380_v6  ;;  %v40_v25 = vsel %vm39_vm0, %v34_v23, %v36_v18  ;;  %v87_v27 = vpop.permute.xlu2 %86  ;;  %v41_v28 = vsel %vm39_vm0, %v32_v19, %v34_v23  ;;  %v27_v30 = vmul.f32 %v25_v22, %v371_v1 }
  0x7e   :  { %v47_v26 = vmul.f32 %v44_v13, %v40_v25  ;;  %v46_v31 = vmul.f32 %v44_v13, %v41_v28 }
  0x80   :  { %v49_v29 = vadd.f32 %v47_v26, %v28_v24  ;;  %v48_v36 = vadd.f32 %v46_v31, %v27_v30  ;;  %v169_v30 = vld [vmem:[%s454_s2] sm:$0xff] }
  0x84   :  { %v55_v32 = vpop.permute.xlu1 %54  ;;  %v53_v33 = vpop.permute.xlu0 %52 }
  0x85   :  { %v57_v34 = vsel %vm56_vm1, %v53_v33, %v55_v32  ;;  %v58_v35 = vsel %vm56_vm1, %v51_v15, %v53_v33  ;;  %v95_v39 = vpop.permute.xlu2 %94 }
  0x86   :  { %v63_v37 = vmul.f32 %v61_v16, %v58_v35  ;;  %v64_v38 = vmul.f32 %v61_v16, %v57_v34 }
  0x88   :  { %v65_v40 = vadd.f32 %v63_v37, %v48_v36  ;;  %v66_v41 = vadd.f32 %v64_v38, %v49_v29  ;;  %v170_v29 = vld [vmem:[%s454_s2 + $0x8] sm:$0xff]  ;;  %s337_s2 = smov [#allocation2]  }
  0x89   :  { %s244_s10 = sshll.u32 %s337_s2, 4  ;;  %s245_s10 = int_to_ptr.vmem [resolvable:$true] %s244_s10 }
  0x8c   :  { %v70_v42 = vpop.permute.xlu1 %69  ;;  %v68_v43 = vpop.permute.xlu0 %67 }
  0x8d   :  { %v106_v44 = vpop.permute.xlu2 %105  ;;  %v75_v58 = vsel %vm73_vm2, %v68_v43, %v70_v42  ;;  %v74_v8 = vsel %vm73_vm2, %v70_v42, %v72_v21 }
  0x94   :  { %v85_v45 = vpop.permute.xlu1 %84  ;;  %v78_v46 = vpop.permute.xlu0 %77 }
  0x95   :  { %v121_v47 = vpop.permute.xlu2 %120  ;;  %v80_v59 = vmul.f32 %v78_v46, %v75_v58  ;;  %v92_v60 = vsel %vm90_vm3, %v85_v45, %v87_v27  ;;  %v81_v10 = vmul.f32 %v78_v46, %v74_v8 }
  0x96   :  { %v97_v0 = vmul.f32 %v95_v39, %v92_v60 }
  0x97   :  { %v82_v63 = vadd.f32 %v80_v59, %v65_v40  ;;  %v83_v21 = vadd.f32 %v81_v10, %v66_v41 }
  0x99   :  { %v99_v6 = vadd.f32 %v97_v0, %v82_v63 }
  0x9c   :  { %v89_v48 = vpop.permute.xlu1 %88  ;;  %v102_v49 = vpop.permute.xlu0 %101 }
  0x9d   :  { %v129_v51 = vpop.permute.xlu2 %128  ;;  %v91_v9 = vsel %vm90_vm3, %v87_v27, %v89_v48 }
  0x9e   :  { %v98_v15 = vmul.f32 %v95_v39, %v91_v9 }
  0xa0   :  { %v100_v26 = vadd.f32 %v98_v15, %v83_v21 }
  0xa4   :  { %v104_v50 = vpop.permute.xlu1 %103  ;;  %v112_v53 = vpop.permute.xlu0 %111 }
  0xa5   :  { %v140_v54 = vpop.permute.xlu2 %139  ;;  %v109_v62 = vsel %vm107_vm4, %v102_v49, %v104_v50  ;;  %v108_v13 = vsel %vm107_vm4, %v104_v50, %v106_v44 }
  0xa6   :  { %v114_v3 = vmul.f32 %v112_v53, %v109_v62  ;;  %v115_v22 = vmul.f32 %v112_v53, %v108_v13 }
  0xa8   :  { %v116_v11 = vadd.f32 %v114_v3, %v99_v6  ;;  %v117_v31 = vadd.f32 %v115_v22, %v100_v26 }
  0xac   :  { %v119_v52 = vpop.permute.xlu1 %118  ;;  %v136_v57 = vpop.permute.xlu0 %135 }
  0xad   :  { %v155_v61 = vpop.permute.xlu2 %154  ;;  %v126_v2 = vsel %vm124_vm5, %v119_v52, %v121_v47 }
  0xae   :  { %v131_v7 = vmul.f32 %v129_v51, %v126_v2 }
  0xb0   :  { %v133_v16 = vadd.f32 %v131_v7, %v116_v11 }
  0xb4   :  { %v123_v55 = vpop.permute.xlu1 %122  ;;  %v146_v5 = vpop.permute.xlu0 %145 }
  0xb5   :  { %v163_v14 = vpop.permute.xlu2 %162  ;;  %v125_v18 = vsel %vm124_vm5, %v121_v47, %v123_v55 }
  0xb6   :  { %v132_v27 = vmul.f32 %v129_v51, %v125_v18 }
  0xb8   :  { %v134_v33 = vadd.f32 %v132_v27, %v117_v31 }
  0xbc   :  { %v138_v1 = vpop.permute.xlu1 %137 }
  0xbd   :  { %v143_v4 = vsel %vm141_vm6, %v136_v57, %v138_v1  ;;  %v142_v25 = vsel %vm141_vm6, %v138_v1, %v140_v54  ;;  %v176_v39 = vpop.permute.xlu0 %175 }
  0xbe   :  { %v148_v12 = vmul.f32 %v146_v5, %v143_v4  ;;  %v149_v32 = vmul.f32 %v146_v5, %v142_v25 }
  0xc0   :  { %v150_v24 = vadd.f32 %v148_v12, %v133_v16  ;;  %v151_v37 = vadd.f32 %v149_v32, %v134_v33 }
  0xc4   :  { %v153_v17 = vpop.permute.xlu1 %152 }
  0xc5   :  { %v160_v19 = vsel %vm158_vm7, %v153_v17, %v155_v61 }
  0xc6   :  { %v165_v23 = vmul.f32 %v163_v14, %v160_v19 }
  0xc8   :  { %v167_v28 = vadd.f32 %v165_v23, %v150_v24 }
  0xca   :  { %205 = vmatpush.msra.mxu0 %v167_v28  ;;  %262 = vmatpush.msra.mxu2 %v167_v28 }
  0xcb   :  { %259 = vmatmul.msk.f32.vlgmr.msra.gmra.mxu2 %vm183_vm8, %v170_v29  ;;  %258 = vmatmul.msk.f32.vlgmr.msra.gmra.mxu0 %vm183_vm8, %v169_v30 }
  0xcc   :  { %v157_v34 = vpop.permute.xlu1 %156 }
  0xcd   :  { %v159_v35 = vsel %vm158_vm7, %v155_v61, %v157_v34 }
  0xce   :  { %v166_v36 = vmul.f32 %v163_v14, %v159_v35 }
  0xd0   :  { %v168_v38 = vadd.f32 %v166_v36, %v151_v37 }
  0xd2   :  { %228 = vmatpush.msra.mxu1 %v168_v38  ;;  %263 = vmatpush.msra.mxu3 %v168_v38 }
  0xd3   :  { %261 = vmatmul.msk.f32.vlgmr.msra.gmra.mxu3 %vm183_vm8, %v170_v29  ;;  %260 = vmatmul.msk.f32.vlgmr.msra.gmra.mxu1 %vm183_vm8, %v169_v30 }
  0xd4   :  { %v181_v42 = vpop.permute.xlu1 %180 }
 0x148   :  { %v207_v40 = vpop.f32.mrf.mxu0 }
 0x149   :  { %v208_v41 = vadd.f32 %v207_v40, %v176_v39 }
 0x14b   :  { %236 = vst [vmem:[#allocation2] sm:$0xff] %v208_v41 }
 0x14e   :  { %v210_v43 = vpop.f32.mrf.mxu2 }
 0x14f   :  { %v211_v44 = vadd.f32 %v210_v43, %v181_v42 }
 0x150   :  { %v230_v45 = vpop.f32.mrf.mxu1 }
 0x151   :  { %238 = vst [vmem:[#allocation2 + $0x10] sm:$0xff] %v211_v44  ;;  %v231_v20 = vadd.f32 %v230_v45, %v176_v39 }
 0x153   :  { %237 = vst [vmem:[#allocation2 + $0x8] sm:$0xff] %v231_v20 }
 0x156   :  { %v233_v46 = vpop.f32.mrf.mxu3 }
 0x157   :  { %v234_v47 = vadd.f32 %v233_v46, %v181_v42 }
 0x159   :  { %239 = vst [vmem:[#allocation2 + $0x18] sm:$0xff] %v234_v47 }
 0x15a   :  { %252 = dma.vmem_to_hbm [thread:$0]  %s245_s10, 512, %s247_s13, [#allocation3], %s338_s14, %s338_s14, %s339_s15  }
 0x15b   :  { %318 = dma.done.wait [#allocation3], 512  }
 0x15c   :  { %319 = vsyncadd [#allocation3], 4294966784 }
 0x15d   :  { %257 = vsyncpa [#allocation3], 1 }

</bundles_post_ra>
